<compile_context>
chip_gen: v7x
topology: tpu7x:2x2x1
jax: 0.10.0
libtpu: 0.0.40
codegen_flags: <defaults>
</compile_context>

<pallas_src>
import functools

import jax
import jax.numpy as jnp
from jax import lax
from jax.experimental import pallas as pl
from jax.experimental.pallas import tpu as pltpu


def _silu(v):
    return v * jax.nn.sigmoid(v)


# -----------------------------------------------------------------------------
# Kernel
# -----------------------------------------------------------------------------
def sppf_kernel(x_ref, w1_ref, b1_ref, w2_ref, b2_ref, o_ref, *, H, W):
    """One batch element per grid step; all tensors are (C, H*W) with H*W on lanes."""
    HW = H * W
    neg = jnp.float32(-jnp.inf)

    x = x_ref[0]                                    # (Cin, HW)
    w1 = w1_ref[...]                                # (hidden, Cin)
    hidden = w1.shape[0]

    # conv1 (1x1, BN folded) + SiLU
    h = jnp.dot(w1, x, preferred_element_type=jnp.float32) + b1_ref[...]
    h = _silu(h)                                    # (hidden, HW)

    # Border masks for the separable 5x5 / s1 / p2 max pool on the flattened
    # lane axis.  Computed once, shared by all three chained pools.
    lane = lax.broadcasted_iota(jnp.int32, (hidden, HW), 1)
    if W & (W - 1) == 0:                            # W power of two -> cheap mask
        wi = jnp.bitwise_and(lane, W - 1)
    else:
        wi = lane % W
    w_valid = [(wi >= s, wi < W - s) for s in (1, 2)]
    h_valid = [(lane >= s * W, lane < (H - s) * W) for s in (1, 2)]

    def pool5(v):
        # 5-wide max along W (within each image row) ...
        r = v
        for s, (m_lo, m_hi) in zip((1, 2), w_valid):
            r = jnp.maximum(r, jnp.where(m_lo, pltpu.roll(v, s, 1), neg))
            r = jnp.maximum(r, jnp.where(m_hi, pltpu.roll(v, HW - s, 1), neg))
        # ... then 5-tall max along H (whole-row shifts on the flat lane axis).
        out = r
        for s, (m_lo, m_hi) in zip((1, 2), h_valid):
            out = jnp.maximum(out, jnp.where(m_lo, pltpu.roll(r, s * W, 1), neg))
            out = jnp.maximum(out, jnp.where(m_hi, pltpu.roll(r, HW - s * W, 1), neg))
        return out

    # conv2 (1x1, BN folded) as a split-accumulated matmul over the four concat
    # groups -- the (4*hidden, HW) concat is never materialized.
    acc = jnp.dot(w2_ref[0], h, preferred_element_type=jnp.float32)
    y = pool5(h)
    acc = acc + jnp.dot(w2_ref[1], y, preferred_element_type=jnp.float32)
    y = pool5(y)
    acc = acc + jnp.dot(w2_ref[2], y, preferred_element_type=jnp.float32)
    y = pool5(y)
    acc = acc + jnp.dot(w2_ref[3], y, preferred_element_type=jnp.float32)

    out = _silu(acc + b2_ref[...])                  # (Cout, HW)
    o_ref[0] = out.astype(o_ref.dtype)


# -----------------------------------------------------------------------------
# Wrapper
# -----------------------------------------------------------------------------
def fold_bn(conv_w, gamma, beta, mean, var, eps=1e-5):
    """Fold BatchNorm into a 1x1 conv.  conv_w: (Cout, Cin, 1, 1)."""
    scale = gamma / jnp.sqrt(var + eps)                       # (Cout,)
    w = conv_w[:, :, 0, 0] * scale[:, None]                   # (Cout, Cin)
    b = beta - mean * scale                                   # (Cout,)
    return w, b[:, None]                                      # (Cout, Cin), (Cout, 1)


@jax.jit
def sppf_forward(x_nchw, w1, b1, w2s, b2):
    """x_nchw: (B, Cin, H, W); w1: (hidden, Cin); b1: (hidden, 1);
    w2s: (4, Cout, hidden); b2: (Cout, 1).  Returns (B, Cout, H, W)."""
    B, Cin, H, W = x_nchw.shape
    hidden = w1.shape[0]
    Cout = w2s.shape[1]
    HW = H * W

    x = x_nchw.reshape(B, Cin, HW)                  # NCHW kept; flatten spatial

    out = pl.pallas_call(
        functools.partial(sppf_kernel, H=H, W=W),
        out_shape=jax.ShapeDtypeStruct((B, Cout, HW), x_nchw.dtype),
        grid_spec=pltpu.PrefetchScalarGridSpec(
            num_scalar_prefetch=0,
            grid=(B,),
            in_specs=[
                pl.BlockSpec((1, Cin, HW), lambda b: (b, 0, 0)),
                pl.BlockSpec((hidden, Cin), lambda b: (0, 0)),
                pl.BlockSpec((hidden, 1), lambda b: (0, 0)),
                pl.BlockSpec((4, Cout, hidden), lambda b: (0, 0, 0)),
                pl.BlockSpec((Cout, 1), lambda b: (0, 0)),
            ],
            out_specs=pl.BlockSpec((1, Cout, HW), lambda b: (b, 0, 0)),
        ),
        compiler_params=pltpu.CompilerParams(
            dimension_semantics=("parallel",),
            vmem_limit_bytes=64 * 1024 * 1024,
        ),
    )(x, w1, b1, w2s, b2)

    return out.reshape(B, Cout, H, W)


# -----------------------------------------------------------------------------
# Pure-JAX reference (for verification)
# -----------------------------------------------------------------------------
def sppf_reference(x_nchw, w1, b1, w2s, b2):
    x = x_nchw.astype(jnp.float32)
    h = jnp.einsum("oc,bchw->bohw", w1, x) + b1[None, :, :, None]
    h = h * jax.nn.sigmoid(h)

    def pool(v):
        return lax.reduce_window(
            v, -jnp.inf, lax.max,
            window_dimensions=(1, 1, 5, 5),
            window_strides=(1, 1, 1, 1),
            padding=((0, 0), (0, 0), (2, 2), (2, 2)))

    y1 = pool(h)
    y2 = pool(y1)
    y3 = pool(y2)
    cat = jnp.concatenate([h, y1, y2, y3], axis=1)            # (B, 4*hidden, H, W)
    w2_full = jnp.concatenate([w2s[k] for k in range(4)], axis=1)  # (Cout, 4*hidden)
    o = jnp.einsum("oc,bchw->bohw", w2_full, cat) + b2[None, :, :, None]
    return o * jax.nn.sigmoid(o)


# -----------------------------------------------------------------------------
# Main
# -----------------------------------------------------------------------------
if __name__ == "__main__":
    key = jax.random.PRNGKey(0)
    B, Cin, H, W = 2, 4, 16, 16
    out_channels = 8
    hidden = Cin // 2  # 2

    k_x, k_w1, k_w2, k_g1, k_g2 = jax.random.split(key, 5)
    x = jax.random.normal(k_x, (B, Cin, H, W), dtype=jnp.float32)

    # conv1: (hidden, Cin, 1, 1), conv2: (out_channels, 4*hidden, 1, 1)
    conv1_w = jax.random.normal(k_w1, (hidden, Cin, 1, 1), jnp.float32) * 0.1
    conv2_w = jax.random.normal(k_w2, (out_channels, 4 * hidden, 1, 1), jnp.float32) * 0.1

    # BatchNorm params (eval-mode statistics), deterministic init.
    g1 = 1.0 + 0.1 * jax.random.normal(k_g1, (hidden,), jnp.float32)
    beta1 = jnp.zeros((hidden,), jnp.float32)
    mean1 = jnp.zeros((hidden,), jnp.float32)
    var1 = jnp.ones((hidden,), jnp.float32)

    g2 = 1.0 + 0.1 * jax.random.normal(k_g2, (out_channels,), jnp.float32)
    beta2 = jnp.zeros((out_channels,), jnp.float32)
    mean2 = jnp.zeros((out_channels,), jnp.float32)
    var2 = jnp.ones((out_channels,), jnp.float32)

    w1, b1 = fold_bn(conv1_w, g1, beta1, mean1, var1)    # (hidden, Cin), (hidden, 1)
    w2f, b2 = fold_bn(conv2_w, g2, beta2, mean2, var2)   # (Cout, 4*hidden), (Cout, 1)
    # Split conv2 weight into the four concat groups: (4, Cout, hidden).
    w2s = jnp.transpose(w2f.reshape(out_channels, 4, hidden), (1, 0, 2))

    out = sppf_forward(x, w1, b1, w2s, b2)
    out = jax.block_until_ready(out)

    ref = sppf_reference(x, w1, b1, w2s, b2)
    assert out.shape == (B, out_channels, H, W), out.shape
    assert jnp.allclose(out, ref, atol=1e-4, rtol=1e-4), \
        float(jnp.max(jnp.abs(out - ref)))

    print("KERNEL_OK")
</pallas_src>

<mosaic_0001>
module attributes {stable_mosaic.version = 11 : i64} {
  func.func @sppf_kernel(%arg0: i32, %arg1: memref<1x4x256xf32, #tpu.memory_space<vmem>>, %arg2: memref<2x4xf32, #tpu.memory_space<vmem>>, %arg3: memref<2x1xf32, #tpu.memory_space<vmem>>, %arg4: memref<4x8x2xf32, #tpu.memory_space<vmem>>, %arg5: memref<8x1xf32, #tpu.memory_space<vmem>>, %arg6: memref<1x8x256xf32, #tpu.memory_space<vmem>>) attributes {dimension_semantics = [#tpu.dimension_semantics<parallel>], iteration_bounds = array<i64: 2>, scalar_prefetch = 0 : i64, scratch_operands = 0 : i64, tpu.core_type = #tpu.core_type<tc>, window_params = [{transform_indices = @transform_0, window_bounds = array<i64: 1, 4, 256>}, {pipeline_mode = #tpu.pipeline_mode<synchronous>, transform_indices = @transform_1, window_bounds = array<i64: 2, 4>}, {pipeline_mode = #tpu.pipeline_mode<synchronous>, transform_indices = @transform_2, window_bounds = array<i64: 2, 1>}, {pipeline_mode = #tpu.pipeline_mode<synchronous>, transform_indices = @transform_3, window_bounds = array<i64: 4, 8, 2>}, {pipeline_mode = #tpu.pipeline_mode<synchronous>, transform_indices = @transform_4, window_bounds = array<i64: 8, 1>}, {transform_indices = @transform_5, window_bounds = array<i64: 1, 8, 256>}]} {
    %c0 = arith.constant 0 : index
    %c0_0 = arith.constant 0 : index
    %c0_1 = arith.constant 0 : index
    %0 = vector.load %arg1[%c0, %c0_0, %c0_1] : memref<1x4x256xf32, #tpu.memory_space<vmem>>, vector<1x4x256xf32>
    %1 = vector.shape_cast %0 : vector<1x4x256xf32> to vector<4x256xf32>
    %c0_2 = arith.constant 0 : index
    %c0_3 = arith.constant 0 : index
    %2 = vector.load %arg2[%c0_2, %c0_3] : memref<2x4xf32, #tpu.memory_space<vmem>>, vector<2x4xf32>
    %cst = arith.constant dense<0.000000e+00> : vector<2x256xf32>
    %3 = tpu.matmul %2, %1, %cst {dimension_numbers = #tpu.dot_dimension_numbers<[1], [0], [0], [1], [0, 0, 1, 1], [], []>} : vector<2x4xf32>, vector<4x256xf32>, vector<2x256xf32> -> vector<2x256xf32>
    %c0_4 = arith.constant 0 : index
    %c0_5 = arith.constant 0 : index
    %4 = vector.load %arg3[%c0_4, %c0_5] : memref<2x1xf32, #tpu.memory_space<vmem>>, vector<2x1xf32>
    %5 = vector.broadcast %4 : vector<2x1xf32> to vector<2x256xf32>
    %6 = arith.addf %3, %5 : vector<2x256xf32>
    %7 = arith.negf %6 : vector<2x256xf32>
    %8 = math.exp %7 : vector<2x256xf32>
    %cst_6 = arith.constant 1.000000e+00 : f32
    %9 = vector.broadcast %cst_6 : f32 to vector<2x256xf32>
    %10 = arith.addf %9, %8 : vector<2x256xf32>
    %11 = arith.divf %9, %10 : vector<2x256xf32>
    %12 = arith.mulf %6, %11 : vector<2x256xf32>
    %13 = tpu.iota {dimensions = array<i32: 1>} : vector<2x256xi32>
    %c15_i32 = arith.constant 15 : i32
    %14 = vector.broadcast %c15_i32 : i32 to vector<2x256xi32>
    %15 = arith.andi %13, %14 : vector<2x256xi32>
    %c1_i32 = arith.constant 1 : i32
    %16 = vector.broadcast %c1_i32 : i32 to vector<2x256xi32>
    %17 = arith.cmpi sge, %15, %16 : vector<2x256xi32>
    %c15_i32_7 = arith.constant 15 : i32
    %18 = vector.broadcast %c15_i32_7 : i32 to vector<2x256xi32>
    %19 = arith.cmpi slt, %15, %18 : vector<2x256xi32>
    %c2_i32 = arith.constant 2 : i32
    %20 = vector.broadcast %c2_i32 : i32 to vector<2x256xi32>
    %21 = arith.cmpi sge, %15, %20 : vector<2x256xi32>
    %c14_i32 = arith.constant 14 : i32
    %22 = vector.broadcast %c14_i32 : i32 to vector<2x256xi32>
    %23 = arith.cmpi slt, %15, %22 : vector<2x256xi32>
    %c16_i32 = arith.constant 16 : i32
    %24 = vector.broadcast %c16_i32 : i32 to vector<2x256xi32>
    %25 = arith.cmpi sge, %13, %24 : vector<2x256xi32>
    %c240_i32 = arith.constant 240 : i32
    %26 = vector.broadcast %c240_i32 : i32 to vector<2x256xi32>
    %27 = arith.cmpi slt, %13, %26 : vector<2x256xi32>
    %c32_i32 = arith.constant 32 : i32
    %28 = vector.broadcast %c32_i32 : i32 to vector<2x256xi32>
    %29 = arith.cmpi sge, %13, %28 : vector<2x256xi32>
    %c224_i32 = arith.constant 224 : i32
    %30 = vector.broadcast %c224_i32 : i32 to vector<2x256xi32>
    %31 = arith.cmpi slt, %13, %30 : vector<2x256xi32>
    %c0_8 = arith.constant 0 : index
    %c0_9 = arith.constant 0 : index
    %c0_10 = arith.constant 0 : index
    %32 = vector.load %arg4[%c0_8, %c0_9, %c0_10] : memref<4x8x2xf32, #tpu.memory_space<vmem>>, vector<1x8x2xf32>
    %33 = vector.shape_cast %32 : vector<1x8x2xf32> to vector<8x2xf32>
    %cst_11 = arith.constant dense<0.000000e+00> : vector<8x256xf32>
    %34 = tpu.matmul %33, %12, %cst_11 {dimension_numbers = #tpu.dot_dimension_numbers<[1], [0], [0], [1], [0, 0, 1, 1], [], []>} : vector<8x2xf32>, vector<2x256xf32>, vector<8x256xf32> -> vector<8x256xf32>
    %c1_i32_12 = arith.constant 1 : i32
    %35 = tpu.dynamic_rotate %12 by %c1_i32_12 dim 1 : vector<2x256xf32>, i32 -> vector<2x256xf32>
    %cst_13 = arith.constant 0xFF800000 : f32
    %36 = vector.broadcast %cst_13 : f32 to vector<2x256xf32>
    %37 = arith.select %17, %35, %36 : vector<2x256xi1>, vector<2x256xf32>
    %38 = arith.maximumf %12, %37 : vector<2x256xf32>
    %c255_i32 = arith.constant 255 : i32
    %39 = tpu.dynamic_rotate %12 by %c255_i32 dim 1 : vector<2x256xf32>, i32 -> vector<2x256xf32>
    %cst_14 = arith.constant 0xFF800000 : f32
    %40 = vector.broadcast %cst_14 : f32 to vector<2x256xf32>
    %41 = arith.select %19, %39, %40 : vector<2x256xi1>, vector<2x256xf32>
    %42 = arith.maximumf %38, %41 : vector<2x256xf32>
    %c2_i32_15 = arith.constant 2 : i32
    %43 = tpu.dynamic_rotate %12 by %c2_i32_15 dim 1 : vector<2x256xf32>, i32 -> vector<2x256xf32>
    %cst_16 = arith.constant 0xFF800000 : f32
    %44 = vector.broadcast %cst_16 : f32 to vector<2x256xf32>
    %45 = arith.select %21, %43, %44 : vector<2x256xi1>, vector<2x256xf32>
    %46 = arith.maximumf %42, %45 : vector<2x256xf32>
    %c254_i32 = arith.constant 254 : i32
    %47 = tpu.dynamic_rotate %12 by %c254_i32 dim 1 : vector<2x256xf32>, i32 -> vector<2x256xf32>
    %cst_17 = arith.constant 0xFF800000 : f32
    %48 = vector.broadcast %cst_17 : f32 to vector<2x256xf32>
    %49 = arith.select %23, %47, %48 : vector<2x256xi1>, vector<2x256xf32>
    %50 = arith.maximumf %46, %49 : vector<2x256xf32>
    %c16_i32_18 = arith.constant 16 : i32
    %51 = tpu.dynamic_rotate %50 by %c16_i32_18 dim 1 : vector<2x256xf32>, i32 -> vector<2x256xf32>
    %cst_19 = arith.constant 0xFF800000 : f32
    %52 = vector.broadcast %cst_19 : f32 to vector<2x256xf32>
    %53 = arith.select %25, %51, %52 : vector<2x256xi1>, vector<2x256xf32>
    %54 = arith.maximumf %50, %53 : vector<2x256xf32>
    %c240_i32_20 = arith.constant 240 : i32
    %55 = tpu.dynamic_rotate %50 by %c240_i32_20 dim 1 : vector<2x256xf32>, i32 -> vector<2x256xf32>
    %cst_21 = arith.constant 0xFF800000 : f32
    %56 = vector.broadcast %cst_21 : f32 to vector<2x256xf32>
    %57 = arith.select %27, %55, %56 : vector<2x256xi1>, vector<2x256xf32>
    %58 = arith.maximumf %54, %57 : vector<2x256xf32>
    %c32_i32_22 = arith.constant 32 : i32
    %59 = tpu.dynamic_rotate %50 by %c32_i32_22 dim 1 : vector<2x256xf32>, i32 -> vector<2x256xf32>
    %cst_23 = arith.constant 0xFF800000 : f32
    %60 = vector.broadcast %cst_23 : f32 to vector<2x256xf32>
    %61 = arith.select %29, %59, %60 : vector<2x256xi1>, vector<2x256xf32>
    %62 = arith.maximumf %58, %61 : vector<2x256xf32>
    %c224_i32_24 = arith.constant 224 : i32
    %63 = tpu.dynamic_rotate %50 by %c224_i32_24 dim 1 : vector<2x256xf32>, i32 -> vector<2x256xf32>
    %cst_25 = arith.constant 0xFF800000 : f32
    %64 = vector.broadcast %cst_25 : f32 to vector<2x256xf32>
    %65 = arith.select %31, %63, %64 : vector<2x256xi1>, vector<2x256xf32>
    %66 = arith.maximumf %62, %65 : vector<2x256xf32>
    %c1 = arith.constant 1 : index
    %c0_26 = arith.constant 0 : index
    %c0_27 = arith.constant 0 : index
    %67 = vector.load %arg4[%c1, %c0_26, %c0_27] : memref<4x8x2xf32, #tpu.memory_space<vmem>>, vector<1x8x2xf32>
    %68 = vector.shape_cast %67 : vector<1x8x2xf32> to vector<8x2xf32>
    %cst_28 = arith.constant dense<0.000000e+00> : vector<8x256xf32>
    %69 = tpu.matmul %68, %66, %cst_28 {dimension_numbers = #tpu.dot_dimension_numbers<[1], [0], [0], [1], [0, 0, 1, 1], [], []>} : vector<8x2xf32>, vector<2x256xf32>, vector<8x256xf32> -> vector<8x256xf32>
    %70 = arith.addf %34, %69 : vector<8x256xf32>
    %c1_i32_29 = arith.constant 1 : i32
    %71 = tpu.dynamic_rotate %66 by %c1_i32_29 dim 1 : vector<2x256xf32>, i32 -> vector<2x256xf32>
    %cst_30 = arith.constant 0xFF800000 : f32
    %72 = vector.broadcast %cst_30 : f32 to vector<2x256xf32>
    %73 = arith.select %17, %71, %72 : vector<2x256xi1>, vector<2x256xf32>
    %74 = arith.maximumf %66, %73 : vector<2x256xf32>
    %c255_i32_31 = arith.constant 255 : i32
    %75 = tpu.dynamic_rotate %66 by %c255_i32_31 dim 1 : vector<2x256xf32>, i32 -> vector<2x256xf32>
    %cst_32 = arith.constant 0xFF800000 : f32
    %76 = vector.broadcast %cst_32 : f32 to vector<2x256xf32>
    %77 = arith.select %19, %75, %76 : vector<2x256xi1>, vector<2x256xf32>
    %78 = arith.maximumf %74, %77 : vector<2x256xf32>
    %c2_i32_33 = arith.constant 2 : i32
    %79 = tpu.dynamic_rotate %66 by %c2_i32_33 dim 1 : vector<2x256xf32>, i32 -> vector<2x256xf32>
    %cst_34 = arith.constant 0xFF800000 : f32
    %80 = vector.broadcast %cst_34 : f32 to vector<2x256xf32>
    %81 = arith.select %21, %79, %80 : vector<2x256xi1>, vector<2x256xf32>
    %82 = arith.maximumf %78, %81 : vector<2x256xf32>
    %c254_i32_35 = arith.constant 254 : i32
    %83 = tpu.dynamic_rotate %66 by %c254_i32_35 dim 1 : vector<2x256xf32>, i32 -> vector<2x256xf32>
    %cst_36 = arith.constant 0xFF800000 : f32
    %84 = vector.broadcast %cst_36 : f32 to vector<2x256xf32>
    %85 = arith.select %23, %83, %84 : vector<2x256xi1>, vector<2x256xf32>
    %86 = arith.maximumf %82, %85 : vector<2x256xf32>
    %c16_i32_37 = arith.constant 16 : i32
    %87 = tpu.dynamic_rotate %86 by %c16_i32_37 dim 1 : vector<2x256xf32>, i32 -> vector<2x256xf32>
    %cst_38 = arith.constant 0xFF800000 : f32
    %88 = vector.broadcast %cst_38 : f32 to vector<2x256xf32>
    %89 = arith.select %25, %87, %88 : vector<2x256xi1>, vector<2x256xf32>
    %90 = arith.maximumf %86, %89 : vector<2x256xf32>
    %c240_i32_39 = arith.constant 240 : i32
    %91 = tpu.dynamic_rotate %86 by %c240_i32_39 dim 1 : vector<2x256xf32>, i32 -> vector<2x256xf32>
    %cst_40 = arith.constant 0xFF800000 : f32
    %92 = vector.broadcast %cst_40 : f32 to vector<2x256xf32>
    %93 = arith.select %27, %91, %92 : vector<2x256xi1>, vector<2x256xf32>
    %94 = arith.maximumf %90, %93 : vector<2x256xf32>
    %c32_i32_41 = arith.constant 32 : i32
    %95 = tpu.dynamic_rotate %86 by %c32_i32_41 dim 1 : vector<2x256xf32>, i32 -> vector<2x256xf32>
    %cst_42 = arith.constant 0xFF800000 : f32
    %96 = vector.broadcast %cst_42 : f32 to vector<2x256xf32>
    %97 = arith.select %29, %95, %96 : vector<2x256xi1>, vector<2x256xf32>
    %98 = arith.maximumf %94, %97 : vector<2x256xf32>
    %c224_i32_43 = arith.constant 224 : i32
    %99 = tpu.dynamic_rotate %86 by %c224_i32_43 dim 1 : vector<2x256xf32>, i32 -> vector<2x256xf32>
    %cst_44 = arith.constant 0xFF800000 : f32
    %100 = vector.broadcast %cst_44 : f32 to vector<2x256xf32>
    %101 = arith.select %31, %99, %100 : vector<2x256xi1>, vector<2x256xf32>
    %102 = arith.maximumf %98, %101 : vector<2x256xf32>
    %c2 = arith.constant 2 : index
    %c0_45 = arith.constant 0 : index
    %c0_46 = arith.constant 0 : index
    %103 = vector.load %arg4[%c2, %c0_45, %c0_46] : memref<4x8x2xf32, #tpu.memory_space<vmem>>, vector<1x8x2xf32>
    %104 = vector.shape_cast %103 : vector<1x8x2xf32> to vector<8x2xf32>
    %cst_47 = arith.constant dense<0.000000e+00> : vector<8x256xf32>
    %105 = tpu.matmul %104, %102, %cst_47 {dimension_numbers = #tpu.dot_dimension_numbers<[1], [0], [0], [1], [0, 0, 1, 1], [], []>} : vector<8x2xf32>, vector<2x256xf32>, vector<8x256xf32> -> vector<8x256xf32>
    %106 = arith.addf %70, %105 : vector<8x256xf32>
    %c1_i32_48 = arith.constant 1 : i32
    %107 = tpu.dynamic_rotate %102 by %c1_i32_48 dim 1 : vector<2x256xf32>, i32 -> vector<2x256xf32>
    %cst_49 = arith.constant 0xFF800000 : f32
    %108 = vector.broadcast %cst_49 : f32 to vector<2x256xf32>
    %109 = arith.select %17, %107, %108 : vector<2x256xi1>, vector<2x256xf32>
    %110 = arith.maximumf %102, %109 : vector<2x256xf32>
    %c255_i32_50 = arith.constant 255 : i32
    %111 = tpu.dynamic_rotate %102 by %c255_i32_50 dim 1 : vector<2x256xf32>, i32 -> vector<2x256xf32>
    %cst_51 = arith.constant 0xFF800000 : f32
    %112 = vector.broadcast %cst_51 : f32 to vector<2x256xf32>
    %113 = arith.select %19, %111, %112 : vector<2x256xi1>, vector<2x256xf32>
    %114 = arith.maximumf %110, %113 : vector<2x256xf32>
    %c2_i32_52 = arith.constant 2 : i32
    %115 = tpu.dynamic_rotate %102 by %c2_i32_52 dim 1 : vector<2x256xf32>, i32 -> vector<2x256xf32>
    %cst_53 = arith.constant 0xFF800000 : f32
    %116 = vector.broadcast %cst_53 : f32 to vector<2x256xf32>
    %117 = arith.select %21, %115, %116 : vector<2x256xi1>, vector<2x256xf32>
    %118 = arith.maximumf %114, %117 : vector<2x256xf32>
    %c254_i32_54 = arith.constant 254 : i32
    %119 = tpu.dynamic_rotate %102 by %c254_i32_54 dim 1 : vector<2x256xf32>, i32 -> vector<2x256xf32>
    %cst_55 = arith.constant 0xFF800000 : f32
    %120 = vector.broadcast %cst_55 : f32 to vector<2x256xf32>
    %121 = arith.select %23, %119, %120 : vector<2x256xi1>, vector<2x256xf32>
    %122 = arith.maximumf %118, %121 : vector<2x256xf32>
    %c16_i32_56 = arith.constant 16 : i32
    %123 = tpu.dynamic_rotate %122 by %c16_i32_56 dim 1 : vector<2x256xf32>, i32 -> vector<2x256xf32>
    %cst_57 = arith.constant 0xFF800000 : f32
    %124 = vector.broadcast %cst_57 : f32 to vector<2x256xf32>
    %125 = arith.select %25, %123, %124 : vector<2x256xi1>, vector<2x256xf32>
    %126 = arith.maximumf %122, %125 : vector<2x256xf32>
    %c240_i32_58 = arith.constant 240 : i32
    %127 = tpu.dynamic_rotate %122 by %c240_i32_58 dim 1 : vector<2x256xf32>, i32 -> vector<2x256xf32>
    %cst_59 = arith.constant 0xFF800000 : f32
    %128 = vector.broadcast %cst_59 : f32 to vector<2x256xf32>
    %129 = arith.select %27, %127, %128 : vector<2x256xi1>, vector<2x256xf32>
    %130 = arith.maximumf %126, %129 : vector<2x256xf32>
    %c32_i32_60 = arith.constant 32 : i32
    %131 = tpu.dynamic_rotate %122 by %c32_i32_60 dim 1 : vector<2x256xf32>, i32 -> vector<2x256xf32>
    %cst_61 = arith.constant 0xFF800000 : f32
    %132 = vector.broadcast %cst_61 : f32 to vector<2x256xf32>
    %133 = arith.select %29, %131, %132 : vector<2x256xi1>, vector<2x256xf32>
    %134 = arith.maximumf %130, %133 : vector<2x256xf32>
    %c224_i32_62 = arith.constant 224 : i32
    %135 = tpu.dynamic_rotate %122 by %c224_i32_62 dim 1 : vector<2x256xf32>, i32 -> vector<2x256xf32>
    %cst_63 = arith.constant 0xFF800000 : f32
    %136 = vector.broadcast %cst_63 : f32 to vector<2x256xf32>
    %137 = arith.select %31, %135, %136 : vector<2x256xi1>, vector<2x256xf32>
    %138 = arith.maximumf %134, %137 : vector<2x256xf32>
    %c3 = arith.constant 3 : index
    %c0_64 = arith.constant 0 : index
    %c0_65 = arith.constant 0 : index
    %139 = vector.load %arg4[%c3, %c0_64, %c0_65] : memref<4x8x2xf32, #tpu.memory_space<vmem>>, vector<1x8x2xf32>
    %140 = vector.shape_cast %139 : vector<1x8x2xf32> to vector<8x2xf32>
    %cst_66 = arith.constant dense<0.000000e+00> : vector<8x256xf32>
    %141 = tpu.matmul %140, %138, %cst_66 {dimension_numbers = #tpu.dot_dimension_numbers<[1], [0], [0], [1], [0, 0, 1, 1], [], []>} : vector<8x2xf32>, vector<2x256xf32>, vector<8x256xf32> -> vector<8x256xf32>
    %142 = arith.addf %106, %141 : vector<8x256xf32>
    %c0_67 = arith.constant 0 : index
    %c0_68 = arith.constant 0 : index
    %143 = vector.load %arg5[%c0_67, %c0_68] : memref<8x1xf32, #tpu.memory_space<vmem>>, vector<8x1xf32>
    %144 = vector.broadcast %143 : vector<8x1xf32> to vector<8x256xf32>
    %145 = arith.addf %142, %144 : vector<8x256xf32>
    %146 = arith.negf %145 : vector<8x256xf32>
    %147 = math.exp %146 : vector<8x256xf32>
    %cst_69 = arith.constant 1.000000e+00 : f32
    %148 = vector.broadcast %cst_69 : f32 to vector<8x256xf32>
    %149 = arith.addf %148, %147 : vector<8x256xf32>
    %150 = arith.divf %148, %149 : vector<8x256xf32>
    %151 = arith.mulf %145, %150 : vector<8x256xf32>
    %c0_70 = arith.constant 0 : index
    %c0_71 = arith.constant 0 : index
    %c0_72 = arith.constant 0 : index
    %152 = vector.load %arg6[%c0_70, %c0_71, %c0_72] : memref<1x8x256xf32, #tpu.memory_space<vmem>>, vector<1x8x256xf32>
    %153 = vector.shape_cast %152 : vector<1x8x256xf32> to vector<8x256xf32>
    %154 = vector.shape_cast %151 : vector<8x256xf32> to vector<1x8x256xf32>
    tpu.vector_store %arg6[%c0_70, %c0_71, %c0_72], %154 {strides = array<i32>} : memref<1x8x256xf32, #tpu.memory_space<vmem>>, vector<1x8x256xf32>,
    return
  }
  func.func @transform_0(%arg0: i32) -> (i32, i32, i32) {
    %c0_i32 = arith.constant 0 : i32
    %c0_i32_0 = arith.constant 0 : i32
    %c0_i32_1 = arith.constant 0 : i32
    return %arg0, %c0_i32, %c0_i32_0 : i32, i32, i32
  }
  func.func @transform_1(%arg0: i32) -> (i32, i32) {
    %c0_i32 = arith.constant 0 : i32
    %c0_i32_0 = arith.constant 0 : i32
    %c0_i32_1 = arith.constant 0 : i32
    return %c0_i32, %c0_i32_0 : i32, i32
  }
  func.func @transform_2(%arg0: i32) -> (i32, i32) {
    %c0_i32 = arith.constant 0 : i32
    %c0_i32_0 = arith.constant 0 : i32
    %c0_i32_1 = arith.constant 0 : i32
    return %c0_i32, %c0_i32_0 : i32, i32
  }
  func.func @transform_3(%arg0: i32) -> (i32, i32, i32) {
    %c0_i32 = arith.constant 0 : i32
    %c0_i32_0 = arith.constant 0 : i32
    %c0_i32_1 = arith.constant 0 : i32
    %c0_i32_2 = arith.constant 0 : i32
    return %c0_i32, %c0_i32_0, %c0_i32_1 : i32, i32, i32
  }
  func.func @transform_4(%arg0: i32) -> (i32, i32) {
    %c0_i32 = arith.constant 0 : i32
    %c0_i32_0 = arith.constant 0 : i32
    %c0_i32_1 = arith.constant 0 : i32
    return %c0_i32, %c0_i32_0 : i32, i32
  }
  func.func @transform_5(%arg0: i32) -> (i32, i32, i32) {
    %c0_i32 = arith.constant 0 : i32
    %c0_i32_0 = arith.constant 0 : i32
    %c0_i32_1 = arith.constant 0 : i32
    return %arg0, %c0_i32, %c0_i32_0 : i32, i32, i32
  }
}

</mosaic_0001>

<bundles_post_ra>
// kernel: sppf_forward.1
= control target key start
LH: loop header
LB: loop body
LE: loop exit
PB: predicated region body
PF: predicated region fallthrough
CT: control target
= control target key end

     0   :  { %10 = vsyncpa [#allocation3], 0  ;;  %s2117_s0 = inlined_call_operand.hbm [shape: f32[2,4,256], index: 0, kind: input, shape index: {}]   ;;  %s2118_s1 = inlined_call_operand.hbm [shape: f32[2,4], index: 1, kind: input, shape index: {}]   ;;  %s2119_s2 = inlined_call_operand.hbm [shape: f32[2,1], index: 2, kind: input, shape index: {}]   ;;  %s2120_s3 = inlined_call_operand.hbm [shape: f32[4,8,2], index: 3, kind: input, shape index: {}]   ;;  %s2121_s4 = inlined_call_operand.hbm [shape: f32[8,1], index: 4, kind: input, shape index: {}]   ;;  %s2122_s5 = inlined_call_operand.hbm [shape: f32[2,8,256], index: 5, kind: output, shape index: {}]  }
   0x1   :  { %12 = vsyncpa [#allocation3 + $0x1], 0 }
   0x2   :  { %13 = vsyncpa [#allocation6], 0 }
   0x3   :  { %14 = vsyncpa [#allocation9], 0 }
   0x4   :  { %15 = vsyncpa [#allocation4], 0 }
   0x5   :  { %17 = vsyncpa [#allocation4 + $0x1], 0  ;;  %s1579_s18 = smov 0   ;;  %s1581_s19 = smov 0  }
   0x6   :  { %s1583_s20 = smov 0   ;;  %s1585_s21 = smov 0  }
   0x7 LB: > { %s1531_s22 = smov [#allocation5]   ;;  %s1600_s24 = sadd.s32 4294967295, %s1529_s21   ;;  %s1529_s21 = sphi %s1585_s21, %s2177_s21   ;;  %s1525_s20 = sphi %s1583_s20, %s2176_s20   ;;  %s1521_s19 = sphi %s1581_s19, %s2175_s19   ;;  %s1517_s18 = sphi %s1579_s18, %s2174_s18  }
   0x8   : > { %s177_s23 = sshll.u32 %s1531_s22, 4  ;;  %p1147_p0 = scmp.ge.s32.totalorder %s1529_s21, 1  ;;  %s178_s23 = int_to_ptr.vmem [resolvable:$true] %s177_s23 }
   0x9   : > { %p2123_p1 = scmp.eq.s32.totalorder %s1600_s24, 0  ;;  %p164_p2 = scmp.lt.s32.totalorder %s1529_s21, 3 }
   0xa   : > { %s1532_s26 = smov [#allocation8]   ;;  %s1533_s29 = smov [#allocation7]  }
   0xb   : > { %p1605_p3 = pnand %p1147_p0, %p164_p2  ;;  %s198_s27 = sshll.u32 %s1532_s26, 4  ;;  %s1612_s27 = int_to_ptr.vmem [resolvable:$true] %s198_s27 }
   0xc   : > { %s188_s30 = sshll.u32 %s1533_s29, 4  ;;  %s1313_s8 = scalar_lea.hbm %s2118_s1, 32  ;;  %s1620_s30 = int_to_ptr.vmem [resolvable:$true] %s188_s30 }
   0xd   : > { %s2136_s25 = scalar_select %p1605_p3, 1, 0 }
   0xe   : > { %p1215_p5 = pneg %p1605_p3  ;;  %p1314_p7 = scmp.ne.s32.totalorder %s2118_s1, %s1313_s8 }
   0xf   : > { %p1320_p11 = scmp.lt.u32.totalorder %s1313_s8, %s2118_s1 }
  0x10   : > { %p1616_p6 = pnand %p1215_p5, %p2123_p1 }
  0x12   : > { %p1630_p8 = pneg %p1616_p6 }
  0x14   : > { %p1316_p9 = pnand %p1630_p8, %p1314_p7 }
  0x16   : > { %p1317_p10 = pneg %p1316_p9 }
  0x18   : > { %p1322_p12 = pnand %p1320_p11, %p1317_p10 }
  0x1a   : > { %1325 = shalt.err (!%p1322_p12)
}
  0x1b   : > { %s1326_s14 = scalar_lea.vmem %s178_s23, 32  ;;  %p1334_p5 = scmp.lt.s32.totalorder %s178_s23, %s178_s23 }
  0x1c   : > { %p1327_p13 = scmp.ne.s32.totalorder %s178_s23, %s1326_s14  ;;  %p1335_p4 = scmp.lt.s32.totalorder %s1326_s14, %s1326_s14 }
  0x1e   : > { %p1329_p0 = pnand %p1327_p13, %p1630_p8  ;;  %p1336_p1 = por %p1335_p4, %p1334_p5 }
  0x20   : > { %p1330_p2 = pneg %p1329_p0 }
  0x22   : > { %p1337_p3 = pnand %p1336_p1, %p1330_p2 }
  0x24   : > { %1340 = shalt.err (!%p1337_p3)
}
  0x25   : > { %1218 = dma.hbm_to_vmem [thread:$0]  (!%p1616_p6), %s2118_s1, 32, %s178_s23, [#allocation6]  }
  0x26   : > { %s1341_s26 = scalar_lea.hbm %s2120_s3, 512 }
  0x27   : > { %p1342_p7 = scmp.ne.s32.totalorder %s2120_s3, %s1341_s26  ;;  %p1348_p1 = scmp.lt.u32.totalorder %s1341_s26, %s2120_s3 }
  0x29   : > { %p1344_p9 = pnand %p1342_p7, %p1630_p8 }
  0x2b   : > { %p1345_p4 = pneg %p1344_p9 }
  0x2d   : > { %p1350_p3 = pnand %p1348_p1, %p1345_p4 }
  0x2f   : > { %1353 = shalt.err (!%p1350_p3)
}
  0x30   : > { %s1354_s23 = scalar_lea.vmem %s1612_s27, 512  ;;  %p1362_p13 = scmp.lt.s32.totalorder %s1612_s27, %s1612_s27 }
  0x31   : > { %p1355_p10 = scmp.ne.s32.totalorder %s1612_s27, %s1354_s23  ;;  %p1363_p0 = scmp.lt.s32.totalorder %s1354_s23, %s1354_s23 }
  0x33   : > { %p1357_p11 = pnand %p1355_p10, %p1630_p8  ;;  %p1364_p2 = por %p1363_p0, %p1362_p13 }
  0x35   : > { %p1358_p12 = pneg %p1357_p11 }
  0x37   : > { %p1365_p5 = pnand %p1364_p2, %p1358_p12 }
  0x39   : > { %1368 = shalt.err (!%p1365_p5)
}
  0x3a   : > { %s1534_s9 = smov 128   ;;  %s1535_s10 = smov 8  }
  0x3b   : > { %1224 = dma.hbm_to_vmem [thread:$0]  (!%p1616_p6), %s2120_s3, 512, %s1612_s27, [#allocation9], %s1534_s9, %s1534_s9, %s1535_s10  }
  0x3c   : > { %s1369_s16 = scalar_lea.hbm %s2119_s2, 32 }
  0x3d   : > { %p1370_p7 = scmp.ne.s32.totalorder %s2119_s2, %s1369_s16  ;;  %p1376_p1 = scmp.lt.u32.totalorder %s1369_s16, %s2119_s2 }
  0x3f   : > { %p1372_p9 = pnand %p1370_p7, %p1630_p8 }
  0x41   : > { %p1373_p4 = pneg %p1372_p9 }
  0x43   : > { %p1378_p3 = pnand %p1376_p1, %p1373_p4 }
  0x45   : > { %1381 = shalt.err (!%p1378_p3)
}
  0x46   : > { %s1382_s27 = scalar_lea.vmem %s1620_s30, 32  ;;  %p1390_p13 = scmp.lt.s32.totalorder %s1620_s30, %s1620_s30 }
  0x47   : > { %p1383_p10 = scmp.ne.s32.totalorder %s1620_s30, %s1382_s27  ;;  %p1391_p0 = scmp.lt.s32.totalorder %s1382_s27, %s1382_s27 }
  0x49   : > { %p1385_p11 = pnand %p1383_p10, %p1630_p8  ;;  %p1392_p2 = por %p1391_p0, %p1390_p13 }
  0x4b   : > { %p1386_p12 = pneg %p1385_p11 }
  0x4d   : > { %p1393_p5 = pnand %p1392_p2, %p1386_p12 }
  0x4f   : > { %1396 = shalt.err (!%p1393_p5)
}
  0x50   : > { %1221 = dma.hbm_to_vmem [thread:$0]  (!%p1616_p6), %s2119_s2, 32, %s1620_s30, [#allocation6]  }
  0x51   : > { %s1536_s8 = smov [#allocation10]   ;;  %s1397_s12 = scalar_lea.hbm %s2121_s4, 128 }
  0x52   : > { %s212_s23 = sshll.u32 %s1536_s8, 4  ;;  %p1398_p7 = scmp.ne.s32.totalorder %s2121_s4, %s1397_s12  ;;  %s213_s23 = int_to_ptr.vmem [resolvable:$true] %s212_s23 }
  0x53   : > { %p1404_p1 = scmp.lt.u32.totalorder %s1397_s12, %s2121_s4 }
  0x54   : > { %p1400_p9 = pnand %p1398_p7, %p1630_p8 }
  0x56   : > { %p1401_p4 = pneg %p1400_p9 }
  0x58   : > { %p1406_p3 = pnand %p1404_p1, %p1401_p4 }
  0x5a   : > { %1409 = shalt.err (!%p1406_p3)
}
  0x5b   : > { %s1410_s30 = scalar_lea.vmem %s213_s23, 128  ;;  %p1418_p13 = scmp.lt.s32.totalorder %s213_s23, %s213_s23 }
  0x5c   : > { %p1411_p10 = scmp.ne.s32.totalorder %s213_s23, %s1410_s30  ;;  %p1419_p0 = scmp.lt.s32.totalorder %s1410_s30, %s1410_s30 }
  0x5e   : > { %p1413_p11 = pnand %p1411_p10, %p1630_p8  ;;  %p1420_p2 = por %p1419_p0, %p1418_p13 }
  0x60   : > { %p1414_p12 = pneg %p1413_p11 }
  0x62   : > { %p1421_p5 = pnand %p1420_p2, %p1414_p12 }
  0x64   : > { %1424 = shalt.err (!%p1421_p5)
}
  0x65   : > { %1227 = dma.hbm_to_vmem [thread:$0]  (!%p1616_p6), %s2121_s4, 128, %s213_s23, [#allocation9]  }
  0x66   : > { %s1146_s11 = sadd.s32 4294967294, %s1529_s21   ;;  %s1712_s28 = sadd.s32 1, %s1529_s21  }
  0x67   : > { %s27_s26 = ssub.s32 %s1529_s21, %s1712_s28  ;;  %s30_s29 = sadd.s32 1, %s1525_s20 }
  0x68   : > { %p28_p8 = scmp.eq.s32.totalorder %s27_s26, 0  ;;  %p37_p7 = scmp.ne.s32.totalorder %s1525_s20, %s1521_s19 }
  0x69   : > { %p38_p9 = scmp.eq.s32.totalorder %s1529_s21, 0  ;;  %p43_p4 = scmp.ne.s32.totalorder %s1521_s19, %s1517_s18 }
  0x6a   : > { %s1723_s27 = scalar_select %p28_p8, %s1525_s20, %s30_s29  }
  0x6b   : > { %p1725_p1 = por %p38_p9, %p37_p7  ;;  %p2140_p3 = scmp.eq.s32.totalorder %s1600_s24, 0 }
  0x6c   : > { %p151_p10 = scmp.eq.s32.totalorder %s1600_s24, 1  ;;  %p157_p11 = scmp.eq.s32.totalorder %s1146_s11, 1 }
  0x6d   : > { %p1731_p6 = por %p2140_p3, %p43_p4  ;;  %p1240_p12 = scmp.lt.s32.totalorder %s1529_s21, 2 }
  0x6e   : > { %s223_s8 = sand.u32 1, %s1525_s20   ;;  %p1738_p13 = por %p151_p10, %p37_p7 }
  0x6f   : > { %p1742_p0 = por %p157_p11, %p43_p4  ;;  %s1153_s10 = sshll.u32 %s223_s8, 3 }
  0x70   : > { %s2142_s23 = scalar_select %p1738_p13, 1, 0 }
  0x71   : > { %s2143_s9 = scalar_select %p1742_p0, 1, 0 }
  0x72   : > { %s1187_s12 = sshll.u32 %s1529_s21, 7  ;;  %s227_s16 = scalar_lea.vmem [#allocation2], %s1153_s10 }
  0x73   : > { %s1750_s15 = scalar_lea.hbm %s2117_s0, %s1187_s12  ;;  %s235_s30 = sshll.u32 %s227_s16, 4  ;;  %s1752_s30 = int_to_ptr.vmem [resolvable:$true] %s235_s30 }
  0x74   : > { %p1756_p2 = pnand %p1240_p12, %p1725_p1  ;;  %s224_s22 = scalar_lea.sflag [#allocation3], %s223_s8 }
  0x75   : > { %s1425_s11 = scalar_lea.hbm %s1750_s15, 128  ;;  %s1430_s10 = scalar_lea.hbm %s2117_s0, 256 }
  0x76   : > { %p1426_p5 = scmp.ne.s32.totalorder %s1750_s15, %s1425_s11  ;;  %p1427_p8 = pneg %p1756_p2 }
  0x77   : > { %p1431_p4 = scmp.lt.u32.totalorder %s1750_s15, %s2117_s0  ;;  %p1432_p1 = scmp.lt.u32.totalorder %s1430_s10, %s1425_s11 }
  0x78   : > { %p1428_p7 = pnand %p1427_p8, %p1426_p5  ;;  %p1434_p10 = scmp.lt.u32.totalorder %s1425_s11, %s1750_s15 }
  0x79   : > { %p1433_p3 = por %p1432_p1, %p1431_p4 }
  0x7a   : > { %p1429_p9 = pneg %p1428_p7 }
  0x7b   : > { %p1435_p11 = por %p1434_p10, %p1433_p3 }
  0x7d   : > { %p1436_p12 = pnand %p1435_p11, %p1429_p9 }
  0x7f   : > { %1439 = shalt.err (!%p1436_p12)
}
  0x80   : > { %s1440_s8 = scalar_lea.vmem %s1752_s30, 128  ;;  %s1537_s13 = smov [#allocation2]  }
  0x81   : > { %p1441_p5 = scmp.ne.s32.totalorder %s1752_s30, %s1440_s8  ;;  %s1445_s14 = sshll.u32 %s1537_s13, 4  ;;  %s1446_s14 = int_to_ptr.vmem [resolvable:$false] %s1445_s14 }
  0x82   : > { %s1447_s16 = scalar_lea.vmem %s1446_s14, 256  ;;  %p1448_p13 = scmp.lt.s32.totalorder %s1752_s30, %s1446_s14 }
  0x83   : > { %p1443_p7 = pnand %p1441_p5, %p1427_p8  ;;  %p1449_p4 = scmp.lt.s32.totalorder %s1447_s16, %s1440_s8 }
  0x85   : > { %p1444_p0 = pneg %p1443_p7  ;;  %p1450_p1 = por %p1449_p4, %p1448_p13 }
  0x87   : > { %p1451_p3 = pnand %p1450_p1, %p1444_p0 }
  0x89   : > { %1454 = shalt.err (!%p1451_p3)
}
  0x8a   : > { %1231 = dma.hbm_to_vmem [thread:$0]  (!%p1756_p2), %s1750_s15, 128, %s1752_s30, %s224_s22  }
  0x8b   : > { %p2145_p9 = scmp.ne.s32.totalorder %s2136_s25, 0 }
  0x8c   : > { %s1788_s11 = sand.u32 (!%p2145_p9), 1, %s1521_s19  }
  0x8d   : > { %244 = sbr.rel (%p2145_p9) target bundleno = 1450 (0x5aa), region = 40  ;;  %s1157_s26 = sshll.u32 (!%p2145_p9), %s1788_s11, 3 }
  0x8e   : > { %s247_s29 = scalar_lea.sflag (!%p2145_p9), [#allocation3], %s1788_s11  ;;  %s250_s10 = scalar_lea.vmem (!%p2145_p9), [#allocation2], %s1157_s26 }
  0x94   : > { %1500 = dma.done.wait (%p1731_p6), %s247_s29, 128  }
  0x95   : > { %1502 = vsyncadd (%p1731_p6), %s247_s29, 4294967168  ;;  %p2146_p13 = scmp.eq.s32.totalorder %s1600_s24, 0 }
  0x97   : > { %1504 = dma.done.wait (%p2146_p13), [#allocation6], 64   ;;  %p2147_p0 = pmov %p2146_p13 }
  0x99   : > { %1506 = vsyncadd (%p2147_p0), [#allocation6], 4294967232  ;;  %p2148_p2 = pmov %p2147_p0 }
  0x9a   : > { %p2149_p8 = pmov %p2147_p0 }
  0x9b   : > { %1508 = dma.done.wait (%p2148_p2), [#allocation9], 640  }
  0x9c   : > { %1510 = vsyncadd (%p2149_p8), [#allocation9], 4294966656  ;;  %v1538_v0 = vmov 0.0   ;;  %v1539_v1 = vmov 0   ;;  %v293_v2 = vld [vmem:[%s250_s10] sm:$0xff]  ;;  %vm307_vm0 = vcmask 1043456   ;;  %v397_v21 = vlaneseq }
  0x9d   : > { %376 = vmatprep.mubr.f32.mxu0 %v1538_v0  ;;  %1294 = vset.pattern.permute.xlu0 %v1539_v1  ;;  %v295_v3 = vld [vmem:[#allocation7] sm:$0x3]  ;;  %v302_v4 = vcombine.high %v293_v2, %v293_v2  ;;  %v294_v5 = vld [vmem:[#allocation5] sm:$0x3]  ;;  %vm303_vm1 = vcmask 31744   ;;  %vm513_vm2 = vcmask 1041408  }
  0x9e   : > { %664 = vmatprep.mubr.f32.mxu1 %v1538_v0  ;;  %1295 = vset.pattern.permute.xlu1 %v1539_v1  ;;  %s1540_s25 = smov 127   ;;  %s1541_s7 = smov 1   ;;  %v1817_v22 = vand.u32 127, %v397_v21 }
  0x9f   : > { %298 = vperm.xlu0 %1294, %v295_v3   ;;  %1163 = vmatprep.subr.msk.mxu0 %vm307_vm0, %v302_v4  ;;  %s1542_s15 = smov 2   ;;  %s1543_s30 = smov 126  }
  0xa0   : > { %1164 = vmatpush1.msk.msra.mxu0 %vm307_vm0, %v293_v2  ;;  %v1820_v23 = vadd.s32 128, %v1817_v22  ;;  %v1823_v24 = vand.u32 15, %v1817_v22  ;;  %vm423_vm3 = vcmp.lt.s32.totalorder %v1817_v22, 1  ;;  %vm434_vm4 = vcmp.lt.s32.totalorder %v1817_v22, 127  ;;  %s1544_s17 = smov 16   ;;  %s1545_s22 = smov 112  }
  0xa1   : > { %1165 = vmatmul.mubr.msk.f32.vlgmr.msra.gmra.mrb[0].mxu0 %vm303_vm1, %v294_v5  ;;  %vm2131_vm9 = vcmp.lt.s32.totalorder %v1817_v22, 2  ;;  %vm2135_vm12 = vcmp.lt.s32.totalorder %v1817_v22, 126  ;;  %s1546_s6 = smov 32   ;;  %s1547_s12 = smov 96   ;;  %vm467_vm15 = vcmp.lt.s32.totalorder %v1817_v22, 16  ;;  %vm2127_vm0 = vcmp.ge.s32.totalorder %v1817_v22, 16 }
  0xa2   : > { %584 = vmatprep.mubr.f32.mxu0 %v1538_v0  ;;  %v1826_v25 = vand.u32 15, %v1820_v23  ;;  %vm402_vm5 = vcmp.ge.s32.totalorder %v1823_v24, 1  ;;  %vm404_vm7 = vcmp.lt.s32.totalorder %v1823_v24, 15  ;;  %vm2132_vm10 = vcmp.ge.s32.totalorder %v1823_v24, 2  ;;  %s1162_s8 = sshll.u32 %s1788_s11, 4  ;;  %s1188_s13 = sshll.u32 %s1600_s24, 8 }
  0xa3   : > { %vm2128_vm13 = vcmp.lt.s32.totalorder %v1823_v24, 14  ;;  %vm2130_vm1 = vcmp.lt.s32.totalorder %v1817_v22, 112  ;;  %s292_s14 = scalar_lea.vmem [#allocation11], %s1162_s8  ;;  %s2073_s10 = scalar_lea.hbm %s2122_s5, %s1188_s13 }
  0xa4   : > { %vm403_vm6 = vcmp.ge.s32.totalorder %v1826_v25, 1  ;;  %vm405_vm8 = vcmp.lt.s32.totalorder %v1826_v25, 15  ;;  %vm2133_vm11 = vcmp.ge.s32.totalorder %v1826_v25, 2  ;;  %vm2126_vm14 = vcmp.lt.s32.totalorder %v1826_v25, 14  ;;  %s1038_s16 = sshll.u32 %s292_s14, 4  ;;  %p2171_p10 = scmp.ne.s32.totalorder %s2142_s23, 0  ;;  %s2075_s16 = int_to_ptr.vmem [resolvable:$true] %s1038_s16 }
  0xa5   : > { %s1455_s24 = scalar_lea.vmem %s2075_s16, 256 }
  0xa6   : > { %p1456_p6 = scmp.ne.s32.totalorder %s2075_s16, %s1455_s24 }
  0xa8   : > { %p1457_p11 = pnand %p1456_p6, %p2171_p10 }
  0xaa   : > { %p1458_p12 = pneg %p1457_p11 }
 0x11e   : > { %v299_v6 = vpop.permute.xlu0 %298 }
 0x174   : > { %v378_v7 = vpop.f32.mrb[0].mxu0 }
 0x175   : > { %v379_v8 = vadd.f32 %v378_v7, %v299_v6  ;;  %v380_v9 = vpop.f32.mrb[1].mxu0 }
 0x176   : > { %v381_v10 = vadd.f32 %v380_v9, %v299_v6 }
 0x177   : > { %v1166_v11 = vmul.f32 -1.442695, %v379_v8 }
 0x178   : > { %v1167_v12 = vmul.f32 -1.442695, %v381_v10 }
 0x179   : > { %1297 = vpow2.f32 %v1166_v11 }
 0x17a   : > { %1299 = vpow2.f32 %v1167_v12 }
 0x183   : > { %v1298_v13 = vpop.eup %1297 }
 0x184   : > { %v1300_v14 = vpop.eup %1299  ;;  %v389_v15 = vadd.f32 1.0, %v1298_v13 }
 0x185   : > { %v390_v16 = vadd.f32 1.0, %v1300_v14 }
 0x186   : > { %1301 = vrcp.f32 %v389_v15 }
 0x187   : > { %1303 = vrcp.f32 %v390_v16 }
 0x190   : > { %v1302_v17 = vpop.eup %1301 }
 0x191   : > { %v1304_v18 = vpop.eup %1303  ;;  %v395_v19 = vmul.f32 %v1302_v17, %v379_v8 }
 0x192   : > { %v396_v20 = vmul.f32 %v1304_v18, %v381_v10 }
 0x193   : > { %430 = vrot.lane.b32.xlu1 %v395_v19, %s1540_s25  ;;  %419 = vrot.lane.b32.xlu0 %v395_v19, %s1541_s7 }
 0x194   : > { %1171 = vmatprep.subr.msk.mxu1 %vm513_vm2, %v396_v20 }
 0x195   : > { %1172 = vmatpush1.msk.msra.mxu1 %vm513_vm2, %v395_v19 }
 0x197   : > { %421 = vrot.lane.b32.xlu1 %v396_v20, %s1541_s7  ;;  %432 = vrot.lane.b32.xlu0 %v396_v20, %s1540_s25 }
 0x19b   : > { %441 = vrot.lane.b32.xlu1 %v395_v19, %s1542_s15  ;;  %443 = vrot.lane.b32.xlu0 %v396_v20, %s1542_s15 }
 0x19f   : > { %452 = vrot.lane.b32.xlu1 %v395_v19, %s1543_s30  ;;  %454 = vrot.lane.b32.xlu0 %v396_v20, %s1543_s30 }
 0x205   : > { %v431_v26 = vpop.permute.xlu1 %430  ;;  %v420_v27 = vpop.permute.xlu0 %419 }
 0x209   : > { %v422_v28 = vpop.permute.xlu1 %421  ;;  %v433_v29 = vpop.permute.xlu0 %432 }
 0x20a   : > { %v424_v30 = vsel %vm423_vm3, %v420_v27, %v422_v28  ;;  %v425_v31 = vsel %vm423_vm3, %v422_v28, %v420_v27  ;;  %v435_v32 = vsel %vm434_vm4, %v431_v26, %v433_v29  ;;  %v436_v33 = vsel %vm434_vm4, %v433_v29, %v431_v26 }
 0x20b   : > { %v426_v34 = vsel %vm402_vm5, %v425_v31, -inf  ;;  %v427_v35 = vsel %vm403_vm6, %v424_v30, -inf  ;;  %v437_v38 = vsel %vm404_vm7, %v435_v32, -inf  ;;  %v438_v39 = vsel %vm405_vm8, %v436_v33, -inf }
 0x20c   : > { %v428_v36 = vmax.f32 %v395_v19, %v426_v34  ;;  %v429_v37 = vmax.f32 %v396_v20, %v427_v35 }
 0x20d   : > { %v442_v40 = vpop.permute.xlu1 %441  ;;  %v444_v41 = vpop.permute.xlu0 %443 }
 0x20e   : > { %v439_v42 = vmax.f32 %v428_v36, %v437_v38  ;;  %v440_v43 = vmax.f32 %v429_v37, %v438_v39  ;;  %v446_v44 = vsel %vm2131_vm9, %v442_v40, %v444_v41  ;;  %v447_v45 = vsel %vm2131_vm9, %v444_v41, %v442_v40 }
 0x20f   : > { %v448_v46 = vsel %vm2132_vm10, %v447_v45, -inf  ;;  %v449_v47 = vsel %vm2133_vm11, %v446_v44, -inf }
 0x210   : > { %v450_v50 = vmax.f32 %v439_v42, %v448_v46  ;;  %v451_v51 = vmax.f32 %v440_v43, %v449_v47 }
 0x211   : > { %v453_v48 = vpop.permute.xlu1 %452  ;;  %v455_v49 = vpop.permute.xlu0 %454 }
 0x212   : > { %v457_v52 = vsel %vm2135_vm12, %v453_v48, %v455_v49  ;;  %v458_v53 = vsel %vm2135_vm12, %v455_v49, %v453_v48 }
 0x213   : > { %v459_v54 = vsel %vm2128_vm13, %v457_v52, -inf  ;;  %v460_v55 = vsel %vm2126_vm14, %v458_v53, -inf  ;;  %vm2129_vm14 = vcmp.lt.s32.totalorder %v1820_v23, 240  ;;  %vm414_vm13 = vcmp.ge.s32.totalorder %v1817_v22, 32 }
 0x214   : > { %v461_v56 = vmax.f32 %v450_v50, %v459_v54  ;;  %v462_v57 = vmax.f32 %v451_v51, %v460_v55 }
 0x216   : > { %465 = vrot.lane.b32.xlu0 %v462_v57, %s1544_s17  ;;  %463 = vrot.lane.b32.xlu1 %v461_v56, %s1544_s17 }
 0x21a   : > { %476 = vrot.lane.b32.xlu0 %v462_v57, %s1545_s22  ;;  %474 = vrot.lane.b32.xlu1 %v461_v56, %s1545_s22 }
 0x21e   : > { %487 = vrot.lane.b32.xlu0 %v462_v57, %s1546_s6  ;;  %485 = vrot.lane.b32.xlu1 %v461_v56, %s1546_s6 }
 0x222   : > { %498 = vrot.lane.b32.xlu0 %v462_v57, %s1547_s12  ;;  %496 = vrot.lane.b32.xlu1 %v461_v56, %s1547_s12 }
 0x288   : > { %v466_v58 = vpop.permute.xlu0 %465  ;;  %v464_v59 = vpop.permute.xlu1 %463 }
 0x289   : > { %v469_v60 = vsel %vm467_vm15, %v466_v58, %v464_v59  ;;  %v468_v62 = vsel %vm467_vm15, %v464_v59, %v466_v58  ;;  %v418_v59 = vld [vmem:[#allocation8] sm:$0xff] }
 0x28a   : > { %v470_v61 = vsel %vm2127_vm0, %v469_v60, -inf  ;;  %vm489_vm0 = vcmp.lt.s32.totalorder %v1817_v22, 32  ;;  %v473_v6 = vmax.f32 %v462_v57, %v468_v62 }
 0x28b   : > { %v472_v2 = vmax.f32 %v461_v56, %v470_v61 }
 0x28c   : > { %v477_v63 = vpop.permute.xlu0 %476  ;;  %v475_v1 = vpop.permute.xlu1 %474 }
 0x28d   : > { %v480_v3 = vsel %vm2130_vm1, %v477_v63, %v475_v1  ;;  %v479_v4 = vsel %vm2130_vm1, %v475_v1, %v477_v63  ;;  %vm417_vm1 = vcmp.lt.s32.totalorder %v1820_v23, 224 }
 0x28e   : > { %v482_v5 = vsel %vm2129_vm14, %v480_v3, -inf  ;;  %v483_v9 = vmax.f32 %v472_v2, %v479_v4  ;;  %vm500_vm14 = vcmp.lt.s32.totalorder %v1817_v22, 96 }
 0x28f   : > { %v484_v10 = vmax.f32 %v473_v6, %v482_v5 }
 0x290   : > { %v488_v7 = vpop.permute.xlu0 %487  ;;  %v486_v8 = vpop.permute.xlu1 %485 }
 0x291   : > { %v491_v11 = vsel %vm489_vm0, %v488_v7, %v486_v8  ;;  %v490_v12 = vsel %vm489_vm0, %v486_v8, %v488_v7 }
 0x292   : > { %v492_v13 = vsel %vm414_vm13, %v491_v11, -inf  ;;  %v495_v17 = vmax.f32 %v484_v10, %v490_v12 }
 0x293   : > { %v494_v14 = vmax.f32 %v483_v9, %v492_v13 }
 0x294   : > { %v499_v15 = vpop.permute.xlu0 %498  ;;  %v497_v16 = vpop.permute.xlu1 %496 }
 0x295   : > { %v501_v18 = vsel %vm500_vm14, %v497_v16, %v499_v15  ;;  %v502_v19 = vsel %vm500_vm14, %v499_v15, %v497_v16 }
 0x296   : > { %v504_v20 = vsel %vm417_vm1, %v502_v19, -inf  ;;  %v505_v21 = vmax.f32 %v494_v14, %v501_v18 }
 0x297   : > { %v506_v26 = vmax.f32 %v495_v17, %v504_v20 }
 0x298   : > { %671 = vrot.lane.b32.xlu1 %v505_v21, %s1541_s7 }
 0x299   : > { %673 = vrot.lane.b32.xlu0 %v506_v26, %s1541_s7  ;;  %1168 = vmatprep.subr.msk.mxu0 %vm513_vm2, %v506_v26 }
 0x29a   : > { %1169 = vmatpush1.msk.msra.mxu0 %vm513_vm2, %v505_v21 }
 0x29c   : > { %681 = vrot.lane.b32.xlu1 %v505_v21, %s1540_s25 }
 0x29d   : > { %683 = vrot.lane.b32.xlu0 %v506_v26, %s1540_s25 }
 0x2a0   : > { %691 = vrot.lane.b32.xlu1 %v505_v21, %s1542_s15 }
 0x2a1   : > { %693 = vrot.lane.b32.xlu0 %v506_v26, %s1542_s15 }
 0x2a4   : > { %701 = vrot.lane.b32.xlu1 %v505_v21, %s1543_s30 }
 0x2a5   : > { %703 = vrot.lane.b32.xlu0 %v506_v26, %s1543_s30 }
 0x30a   : > { %v672_v27 = vpop.permute.xlu1 %671 }
 0x30b   : > { %v674_v28 = vpop.permute.xlu0 %673 }
 0x30c   : > { %v675_v29 = vsel %vm423_vm3, %v672_v27, %v674_v28  ;;  %v676_v30 = vsel %vm423_vm3, %v674_v28, %v672_v27 }
 0x30d   : > { %v677_v35 = vsel %vm402_vm5, %v676_v30, -inf  ;;  %v678_v36 = vsel %vm403_vm6, %v675_v29, -inf }
 0x30e   : > { %v682_v31 = vpop.permute.xlu1 %681  ;;  %v679_v41 = vmax.f32 %v505_v21, %v677_v35  ;;  %v680_v42 = vmax.f32 %v506_v26, %v678_v36 }
 0x30f   : > { %v684_v32 = vpop.permute.xlu0 %683 }
 0x310   : > { %v685_v33 = vsel %vm434_vm4, %v682_v31, %v684_v32  ;;  %v686_v34 = vsel %vm434_vm4, %v684_v32, %v682_v31 }
 0x311   : > { %v687_v38 = vsel %vm404_vm7, %v685_v33, -inf  ;;  %v688_v39 = vsel %vm405_vm8, %v686_v34, -inf }
 0x312   : > { %v692_v37 = vpop.permute.xlu1 %691  ;;  %v689_v47 = vmax.f32 %v679_v41, %v687_v38  ;;  %v690_v48 = vmax.f32 %v680_v42, %v688_v39 }
 0x313   : > { %v694_v40 = vpop.permute.xlu0 %693 }
 0x314   : > { %v695_v43 = vsel %vm2131_vm9, %v692_v37, %v694_v40  ;;  %v696_v44 = vsel %vm2131_vm9, %v694_v40, %v692_v37  ;;  %vm2150_vm9 = vcmp.lt.s32.totalorder %v1823_v24, 14 }
 0x315   : > { %v697_v45 = vsel %vm2132_vm10, %v696_v44, -inf  ;;  %v698_v46 = vsel %vm2133_vm11, %v695_v43, -inf  ;;  %vm2151_vm10 = vcmp.lt.s32.totalorder %v1826_v25, 14  ;;  %vm2134_vm11 = vcmask 15360  }
 0x316   : > { %v702_v49 = vpop.permute.xlu1 %701  ;;  %v699_v51 = vmax.f32 %v689_v47, %v697_v45  ;;  %v700_v52 = vmax.f32 %v690_v48, %v698_v46  ;;  %1173 = vmatmul.mubr.msk.f32.vlgmr.msra.gmra.mrb[0].mxu1 %vm2134_vm11, %v418_v59 }
 0x317   : > { %v704_v50 = vpop.permute.xlu0 %703  ;;  %826 = vmatprep.mubr.f32.mxu1 %v1538_v0 }
 0x318   : > { %v705_v53 = vsel %vm2135_vm12, %v702_v49, %v704_v50  ;;  %v706_v54 = vsel %vm2135_vm12, %v704_v50, %v702_v49  ;;  %vm2155_vm12 = vcmp.lt.s32.totalorder %v1820_v23, 240 }
 0x319   : > { %v707_v55 = vsel %vm2150_vm9, %v705_v53, -inf  ;;  %v708_v56 = vsel %vm2151_vm10, %v706_v54, -inf  ;;  %vm2152_vm9 = vcmp.ge.s32.totalorder %v1817_v22, 16  ;;  %vm2153_vm10 = vcmp.lt.s32.totalorder %v1817_v22, 112 }
 0x31a   : > { %v709_v57 = vmax.f32 %v699_v51, %v707_v55  ;;  %v710_v58 = vmax.f32 %v700_v52, %v708_v56  ;;  %vm2154_vm11 = vmmov %vm2153_vm10 }
 0x31c   : > { %713 = vrot.lane.b32.xlu0 %v710_v58, %s1544_s17  ;;  %711 = vrot.lane.b32.xlu1 %v709_v57, %s1544_s17 }
 0x320   : > { %723 = vrot.lane.b32.xlu0 %v710_v58, %s1545_s22  ;;  %721 = vrot.lane.b32.xlu1 %v709_v57, %s1545_s22 }
 0x324   : > { %733 = vrot.lane.b32.xlu0 %v710_v58, %s1546_s6  ;;  %731 = vrot.lane.b32.xlu1 %v709_v57, %s1546_s6 }
 0x328   : > { %743 = vrot.lane.b32.xlu0 %v710_v58, %s1547_s12  ;;  %741 = vrot.lane.b32.xlu1 %v709_v57, %s1547_s12 }
 0x38e   : > { %v714_v60 = vpop.permute.xlu0 %713  ;;  %v712_v61 = vpop.permute.xlu1 %711 }
 0x38f   : > { %v716_v62 = vsel %vm467_vm15, %v714_v60, %v712_v61  ;;  %v715_v1 = vsel %vm467_vm15, %v712_v61, %v714_v60 }
 0x390   : > { %v717_v63 = vsel %vm2152_vm9, %v716_v62, -inf  ;;  %v720_v8 = vmax.f32 %v710_v58, %v715_v1  ;;  %vm2164_vm9 = vcmask 15360   ;;  %v508_v62 = vld [vmem:[#allocation8 + $0x8] sm:$0xff] }
 0x391   : > { %v719_v4 = vmax.f32 %v709_v57, %v717_v63  ;;  %v752_v57 = vld [vmem:[#allocation8 + $0x10] sm:$0xff] }
 0x392   : > { %v724_v2 = vpop.permute.xlu0 %723  ;;  %v722_v3 = vpop.permute.xlu1 %721 }
 0x393   : > { %v726_v5 = vsel %vm2153_vm10, %v724_v2, %v722_v3  ;;  %v725_v6 = vsel %vm2154_vm11, %v722_v3, %v724_v2  ;;  %vm2162_vm11 = vcmp.lt.s32.totalorder %v1823_v24, 14  ;;  %vm2165_vm10 = vmmov %vm2164_vm9 }
 0x394   : > { %v728_v7 = vsel %vm2155_vm12, %v726_v5, -inf  ;;  %v729_v11 = vmax.f32 %v719_v4, %v725_v6  ;;  %vm2163_vm12 = vcmp.lt.s32.totalorder %v1826_v25, 14  ;;  %1170 = vmatmul.mubr.msk.f32.vlgmr.msra.gmra.mrb[2].mxu0 %vm2165_vm10, %v508_v62 }
 0x395   : > { %v730_v12 = vmax.f32 %v720_v8, %v728_v7 }
 0x396   : > { %v734_v9 = vpop.permute.xlu0 %733  ;;  %v732_v10 = vpop.permute.xlu1 %731 }
 0x397   : > { %v736_v13 = vsel %vm489_vm0, %v734_v9, %v732_v10  ;;  %v735_v14 = vsel %vm489_vm0, %v732_v10, %v734_v9 }
 0x398   : > { %v737_v15 = vsel %vm414_vm13, %v736_v13, -inf  ;;  %v740_v19 = vmax.f32 %v730_v12, %v735_v14 }
 0x399   : > { %v739_v16 = vmax.f32 %v729_v11, %v737_v15 }
 0x39a   : > { %v744_v17 = vpop.permute.xlu0 %743  ;;  %v742_v18 = vpop.permute.xlu1 %741 }
 0x39b   : > { %v745_v20 = vsel %vm500_vm14, %v742_v18, %v744_v17  ;;  %v746_v21 = vsel %vm500_vm14, %v744_v17, %v742_v18 }
 0x39c   : > { %v748_v26 = vsel %vm417_vm1, %v746_v21, -inf  ;;  %v749_v27 = vmax.f32 %v739_v16, %v745_v20 }
 0x39d   : > { %v750_v28 = vmax.f32 %v740_v19, %v748_v26 }
 0x39e   : > { %835 = vrot.lane.b32.xlu1 %v749_v27, %s1541_s7 }
 0x39f   : > { %837 = vrot.lane.b32.xlu0 %v750_v28, %s1541_s7  ;;  %1174 = vmatprep.subr.msk.mxu1 %vm513_vm2, %v750_v28  ;;  %s1548_s7 = smov [#allocation11]  }
 0x3a0   : > { %1175 = vmatpush1.msk.msra.mxu1 %vm513_vm2, %v749_v27 }
 0x3a1   : > { %1176 = vmatmul.mubr.msk.f32.vlgmr.msra.gmra.mrb[0].mxu1 %vm2164_vm9, %v752_v57 }
 0x3a2   : > { %845 = vrot.lane.b32.xlu1 %v749_v27, %s1540_s25  ;;  %990 = vmatprep.mubr.f32.mxu1 %v1538_v0  ;;  %v999_v0 = vld [vmem:[#allocation10] sm:$0xff] }
 0x3a3   : > { %847 = vrot.lane.b32.xlu0 %v750_v28, %s1540_s25  ;;  %s1024_s25 = scalar_lea.sflag [#allocation4], %s1788_s11 }
 0x3a6   : > { %855 = vrot.lane.b32.xlu1 %v749_v27, %s1542_s15 }
 0x3a7   : > { %857 = vrot.lane.b32.xlu0 %v750_v28, %s1542_s15  ;;  %s1459_s15 = sshll.u32 %s1548_s7, 4  ;;  %s1460_s15 = int_to_ptr.vmem [resolvable:$false] %s1459_s15 }
 0x3a8   : > { %p1462_p5 = scmp.lt.s32.totalorder %s2075_s16, %s1460_s15 }
 0x3aa   : > { %865 = vrot.lane.b32.xlu1 %v749_v27, %s1543_s30 }
 0x3ab   : > { %867 = vrot.lane.b32.xlu0 %v750_v28, %s1543_s30  ;;  %s1461_s30 = scalar_lea.vmem %s1460_s15, 512 }
 0x3ac   : > { %p1463_p7 = scmp.lt.s32.totalorder %s1461_s30, %s1455_s24 }
 0x3ae   : > { %p1464_p4 = por %p1463_p7, %p1462_p5 }
 0x3b0   : > { %p1465_p1 = pnand %p1464_p4, %p1458_p12 }
 0x410   : > { %v836_v29 = vpop.permute.xlu1 %835 }
 0x411   : > { %v838_v30 = vpop.permute.xlu0 %837 }
 0x412   : > { %v839_v31 = vsel %vm423_vm3, %v836_v29, %v838_v30  ;;  %v840_v32 = vsel %vm423_vm3, %v838_v30, %v836_v29  ;;  %vm2156_vm3 = vcmp.lt.s32.totalorder %v1817_v22, 2  ;;  %v916_v30 = vld [vmem:[#allocation8 + $0x18] sm:$0xff] }
 0x413   : > { %v841_v37 = vsel %vm402_vm5, %v840_v32, -inf  ;;  %v842_v38 = vsel %vm403_vm6, %v839_v31, -inf  ;;  %vm2158_vm5 = vcmp.ge.s32.totalorder %v1823_v24, 2  ;;  %vm2159_vm6 = vcmp.ge.s32.totalorder %v1826_v25, 2 }
 0x414   : > { %v846_v33 = vpop.permute.xlu1 %845  ;;  %v843_v43 = vmax.f32 %v749_v27, %v841_v37  ;;  %v844_v44 = vmax.f32 %v750_v28, %v842_v38 }
 0x415   : > { %v848_v34 = vpop.permute.xlu0 %847 }
 0x416   : > { %v849_v35 = vsel %vm434_vm4, %v846_v33, %v848_v34  ;;  %v850_v36 = vsel %vm434_vm4, %v848_v34, %v846_v33  ;;  %vm2157_vm4 = vmmov %vm2156_vm3 }
 0x417   : > { %v851_v40 = vsel %vm404_vm7, %v849_v35, -inf  ;;  %v852_v41 = vsel %vm405_vm8, %v850_v36, -inf  ;;  %vm2160_vm7 = vcmp.lt.s32.totalorder %v1817_v22, 126 }
 0x418   : > { %v856_v39 = vpop.permute.xlu1 %855  ;;  %v853_v49 = vmax.f32 %v843_v43, %v851_v40  ;;  %v854_v50 = vmax.f32 %v844_v44, %v852_v41  ;;  %vm2161_vm8 = vmmov %vm2160_vm7 }
 0x419   : > { %v858_v42 = vpop.permute.xlu0 %857 }
 0x41a   : > { %v859_v45 = vsel %vm2156_vm3, %v856_v39, %v858_v42  ;;  %v860_v46 = vsel %vm2157_vm4, %v858_v42, %v856_v39  ;;  %vm2166_vm3 = vcmp.ge.s32.totalorder %v1817_v22, 16  ;;  %vm2167_vm4 = vcmp.lt.s32.totalorder %v1817_v22, 112 }
 0x41b   : > { %v861_v47 = vsel %vm2158_vm5, %v860_v46, -inf  ;;  %v862_v48 = vsel %vm2159_vm6, %v859_v45, -inf  ;;  %vm2168_vm5 = vcmp.lt.s32.totalorder %v1820_v23, 240  ;;  %vm2169_vm6 = vmmov %vm2167_vm4 }
 0x41c   : > { %v866_v51 = vpop.permute.xlu1 %865  ;;  %v863_v53 = vmax.f32 %v853_v49, %v861_v47  ;;  %v864_v54 = vmax.f32 %v854_v50, %v862_v48 }
 0x41d   : > { %v868_v52 = vpop.permute.xlu0 %867 }
 0x41e   : > { %v869_v55 = vsel %vm2160_vm7, %v866_v51, %v868_v52  ;;  %v870_v56 = vsel %vm2161_vm8, %v868_v52, %v866_v51 }
 0x41f   : > { %v871_v58 = vsel %vm2162_vm11, %v869_v55, -inf  ;;  %v872_v59 = vsel %vm2163_vm12, %v870_v56, -inf }
 0x420   : > { %v873_v60 = vmax.f32 %v863_v53, %v871_v58  ;;  %v874_v61 = vmax.f32 %v864_v54, %v872_v59 }
 0x422   : > { %877 = vrot.lane.b32.xlu0 %v874_v61, %s1544_s17  ;;  %875 = vrot.lane.b32.xlu1 %v873_v60, %s1544_s17 }
 0x426   : > { %887 = vrot.lane.b32.xlu0 %v874_v61, %s1545_s22  ;;  %885 = vrot.lane.b32.xlu1 %v873_v60, %s1545_s22 }
 0x42a   : > { %897 = vrot.lane.b32.xlu0 %v874_v61, %s1546_s6  ;;  %895 = vrot.lane.b32.xlu1 %v873_v60, %s1546_s6 }
 0x42e   : > { %907 = vrot.lane.b32.xlu0 %v874_v61, %s1547_s12  ;;  %905 = vrot.lane.b32.xlu1 %v873_v60, %s1547_s12 }
 0x432   : > { %1002 = vperm.xlu1 %1295, %v999_v0  }
 0x467   : > { %v586_v31 = vpop.f32.mrb[2].mxu0 }
 0x468   : > { %v588_v32 = vpop.f32.mrb[3].mxu0 }
 0x494   : > { %v878_v24 = vpop.permute.xlu0 %877  ;;  %v876_v25 = vpop.permute.xlu1 %875 }
 0x495   : > { %v880_v63 = vsel %vm467_vm15, %v878_v24, %v876_v25  ;;  %v879_v2 = vsel %vm467_vm15, %v876_v25, %v878_v24 }
 0x496   : > { %v881_v1 = vsel %vm2166_vm3, %v880_v63, -inf  ;;  %v884_v8 = vmax.f32 %v874_v61, %v879_v2 }
 0x497   : > { %v883_v6 = vmax.f32 %v873_v60, %v881_v1 }
 0x498   : > { %v888_v3 = vpop.permute.xlu0 %887  ;;  %v886_v4 = vpop.permute.xlu1 %885 }
 0x499   : > { %v890_v5 = vsel %vm2167_vm4, %v888_v3, %v886_v4  ;;  %v889_v9 = vsel %vm2169_vm6, %v886_v4, %v888_v3 }
 0x49a   : > { %v892_v7 = vsel %vm2168_vm5, %v890_v5, -inf  ;;  %v893_v14 = vmax.f32 %v883_v6, %v889_v9 }
 0x49b   : > { %v894_v12 = vmax.f32 %v884_v8, %v892_v7 }
 0x49c   : > { %v898_v10 = vpop.permute.xlu0 %897  ;;  %v896_v11 = vpop.permute.xlu1 %895 }
 0x49d   : > { %v900_v13 = vsel %vm489_vm0, %v898_v10, %v896_v11  ;;  %v899_v15 = vsel %vm489_vm0, %v896_v11, %v898_v10 }
 0x49e   : > { %v901_v16 = vsel %vm414_vm13, %v900_v13, -inf  ;;  %v904_v20 = vmax.f32 %v894_v12, %v899_v15  ;;  %vm2170_vm13 = vmmov %vm2164_vm9 }
 0x49f   : > { %v903_v17 = vmax.f32 %v893_v14, %v901_v16 }
 0x4a0   : > { %v908_v18 = vpop.permute.xlu0 %907  ;;  %v906_v19 = vpop.permute.xlu1 %905 }
 0x4a1   : > { %v909_v21 = vsel %vm500_vm14, %v906_v19, %v908_v18  ;;  %v910_v26 = vsel %vm500_vm14, %v908_v18, %v906_v19 }
 0x4a2   : > { %v912_v27 = vsel %vm417_vm1, %v910_v26, -inf  ;;  %v913_v29 = vmax.f32 %v903_v17, %v909_v21 }
 0x4a3   : > { %v914_v28 = vmax.f32 %v904_v20, %v912_v27 }
 0x4a5   : > { %1177 = vmatprep.subr.msk.mxu1 %vm513_vm2, %v914_v28 }
 0x4a6   : > { %1178 = vmatpush1.msk.msra.mxu1 %vm513_vm2, %v913_v29 }
 0x4a7   : > { %1179 = vmatmul.mubr.msk.f32.vlgmr.msra.gmra.mrb[0].mxu1 %vm2170_vm13, %v916_v30 }
 0x4b1   : > { %v1003_v34 = vpop.permute.xlu1 %1002 }
 0x57a   : > { %v992_v33 = vpop.f32.mrb[0].mxu1 }
 0x57b   : > { %v1189_v35 = vadd.f32 %v992_v33, %v586_v31  ;;  %v994_v22 = vpop.f32.mrb[1].mxu1 }
 0x57c   : > { %v1190_v36 = vadd.f32 %v994_v22, %v588_v32 }
 0x57d   : > { %v1005_v23 = vadd.f32 %v1189_v35, %v1003_v34 }
 0x57e   : > { %v1006_v37 = vadd.f32 %v1190_v36, %v1003_v34 }
 0x57f   : > { %v1180_v38 = vmul.f32 -1.442695, %v1005_v23 }
 0x580   : > { %v1181_v39 = vmul.f32 -1.442695, %v1006_v37 }
 0x581   : > { %1305 = vpow2.f32 %v1180_v38 }
 0x582   : > { %1307 = vpow2.f32 %v1181_v39 }
 0x58b   : > { %v1306_v40 = vpop.eup %1305 }
 0x58c   : > { %v1308_v41 = vpop.eup %1307  ;;  %v1013_v42 = vadd.f32 1.0, %v1306_v40 }
 0x58d   : > { %v1014_v43 = vadd.f32 1.0, %v1308_v41 }
 0x58e   : > { %1309 = vrcp.f32 %v1013_v42 }
 0x58f   : > { %1311 = vrcp.f32 %v1014_v43 }
 0x598   : > { %v1310_v44 = vpop.eup %1309 }
 0x599   : > { %v1312_v45 = vpop.eup %1311  ;;  %v1019_v46 = vmul.f32 %v1310_v44, %v1005_v23 }
 0x59a   : > { %v1020_v47 = vmul.f32 %v1312_v45, %v1006_v37 }
 0x59b   : > { %1021 = vst [vmem:[%s292_s14] sm:$0xff] %v1019_v46 }
 0x59c   : > { %1022 = vst [vmem:[%s292_s14 + $0x8] sm:$0xff] %v1020_v47 }
 0x59d   : > { %1468 = shalt.err (!%p1465_p1)
}
 0x59e   : > { %s1469_s11 = scalar_lea.hbm %s2073_s10, 256  ;;  %s1473_s6 = scalar_lea.hbm %s2122_s5, 512 }
 0x59f   : > { %p1470_p3 = scmp.ne.s32.totalorder %s2073_s10, %s1469_s11  ;;  %p1474_p0 = scmp.lt.u32.totalorder %s2073_s10, %s2122_s5 }
 0x5a0   : > { %p1475_p2 = scmp.lt.u32.totalorder %s1473_s6, %s1469_s11  ;;  %p1477_p6 = scmp.lt.u32.totalorder %s1469_s11, %s2073_s10 }
 0x5a1   : > { %p1471_p9 = pnand %p1470_p3, %p2171_p10 }
 0x5a2   : > { %p1476_p8 = por %p1475_p2, %p1474_p0 }
 0x5a3   : > { %p1472_p13 = pneg %p1471_p9 }
 0x5a4   : > { %p1478_p11 = por %p1477_p6, %p1476_p8 }
 0x5a6   : > { %p1479_p12 = pnand %p1478_p11, %p1472_p13 }
 0x5a8   : > { %1482 = shalt.err (!%p1479_p12)
}
 0x5a9   : > { %1213 = dma.vmem_to_hbm [thread:$0]  (%p2171_p10), %s2075_s16, 256, %s2073_s10, %s1024_s25  }
 0x5aa PF: > { %s1050_s13 = sand.u32 1, %s1517_s18   ;;  %p2172_p5 = scmp.ne.s32.totalorder %s2143_s9, 0 }
 0x5ab   : > { %p2173_p7 = scmp.ge.s32.totalorder %s1529_s21, 2  ;;  %s1051_s14 = scalar_lea.sflag [#allocation4], %s1050_s13 }
 0x5ad   : > { %p1233_p4 = pnand %p2173_p7, %p2172_p5 }
 0x5af   : > { %1512 = dma.done.wait (!%p1233_p4), %s1051_s14, 256  }
 0x5b0   : > { %1514 = vsyncadd (!%p1233_p4), %s1051_s14, 4294967040  ;;  %p20_p1 = scmp.ge.s32.totalorder %s1712_s28, 4   ;;  %s2174_s18 = smov %s1521_s19 }
 0x5b1   : > { %s2175_s19 = smov %s1525_s20  ;;  %s2176_s20 = smov %s1723_s27 }
 0x5b2   : > { %s2177_s21 = smov %s1712_s28  ;;  %22 = sbr.rel (!%p20_p1) target bundleno = 7 (0x7), region = 104 }
 0x5b9   :  { %1056 = vsyncpa [#allocation3], 1 }
 0x5ba   :  { %1058 = vsyncpa [#allocation3 + $0x1], 1 }
 0x5bb   :  { %1059 = vsyncpa [#allocation6], 1 }
 0x5bc   :  { %1060 = vsyncpa [#allocation9], 1 }
 0x5bd   :  { %1061 = vsyncpa [#allocation4], 1 }
 0x5be   :  { %1063 = vsyncpa [#allocation4 + $0x1], 1 }

</bundles_post_ra>
